<compile_context>
chip_gen: v7x
topology: tpu7x:2x2x1
jax: 0.10.0
libtpu: 0.0.40
codegen_flags: <defaults>
</compile_context>

<pallas_src>
import jax
import jax.numpy as jnp
from jax.experimental import pallas as pl
from jax.experimental.pallas import tpu as pltpu

KEEP_PROB = 0.2                               # 1 - dropout_p (p = 0.8)
# floor(0.2 * 2^24): keep probability is 0.19999992 (off by 6e-8 -- negligible).
KEEP_THRESHOLD = int(KEEP_PROB * (1 << 24))


def _round_up(x, m):
    return (x + m - 1) // m * m


def _keep_mask(idx_i32, seed_i32):
    """Stateless hash PRNG (murmur-style finalizer): P(keep) = KEEP_PROB.

    Pure int32 VPU ops, portable across TPU generations and interpret mode.
    NOTE: idx is a flat int32 index (global_row * hid_pad + col); it wraps if
    B_pad * hid_pad exceeds 2^31 (mask stays pseudo-random but repeats).
    """
    z = idx_i32 * jnp.int32(-1640531527) + seed_i32 * jnp.int32(-1028477387)
    z = z ^ jax.lax.shift_right_logical(z, 16)
    z = z * jnp.int32(-2048144789)
    z = z ^ jax.lax.shift_right_logical(z, 13)
    z = z * jnp.int32(-1028477387)
    z = z ^ jax.lax.shift_right_logical(z, 16)
    return (z & jnp.int32(0x00FFFFFF)) < jnp.int32(KEEP_THRESHOLD)


def _mlp_kernel(seed_ref, x_ref, w1_ref, b1_ref, w2_ref, b2_ref, o_ref):
    # ---- Linear 1: bf16 operands (pre-cast in wrapper) -> f32 accumulation on MXU.
    h = jnp.dot(x_ref[...], w1_ref[...], preferred_element_type=jnp.float32)
    h = jnp.tanh(h + b1_ref[...])             # b1 is (1, hid_pad) f32 -> broadcasts

    # ---- Dropout (training semantics, keep prob 0.2). The 1/keep_prob rescale is
    # folded into w2 in the wrapper: (mask*h) @ (5*w2) == (mask*5*h) @ w2.
    tb, hd = h.shape
    row = jax.lax.broadcasted_iota(jnp.int32, (tb, 1), 0)      # per-row index
    col = jax.lax.broadcasted_iota(jnp.int32, (1, hd), 1)      # per-lane index
    row_off = (row + pl.program_id(0) * tb) * jnp.int32(hd)    # cheap: (tb,1) work only
    keep = _keep_mask(row_off + col, seed_ref[0])              # broadcast -> (tb, hd)
    h16 = h.astype(jnp.bfloat16)
    h16 = jnp.where(keep, h16, jnp.zeros_like(h16))            # select in bf16

    # ---- Linear 2 (bf16 into MXU, f32 accumulation) + bias + ReLU.
    out = jnp.dot(h16, w2_ref[...], preferred_element_type=jnp.float32) + b2_ref[...]
    o_ref[...] = jnp.maximum(out, 0.0).astype(o_ref.dtype)


def _choose_tile_b(B, img_dim, hid_pad, att_pad):
    """Batch tile: multiple of 16 when the grid has >1 step (bf16 x tiles),
    minimal padding waste, VMEM-bounded, >=2 grid steps when possible (v7x)."""
    B8 = _round_up(max(B, 1), 8)

    def tile_bytes(t):
        # double-buffered streamed tiles (x bf16, out f32) + f32 intermediates
        return 2 * (2 * t * img_dim + 4 * t * att_pad) + 3 * 4 * t * hid_pad

    if B8 < 128:
        # Small batch: single tile covering it, or split in two when that still
        # divides cleanly (gives v7x's second TensorCore work).
        half = _round_up((B8 + 1) // 2, 16)
        if B8 > 16 and _round_up(B, half) // half >= 2:
            return half
        return B8

    budget = 24 << 20   # streamed+intermediate VMEM budget (v7x has 64 MiB total)
    best = None
    for t in (512, 256, 128):
        if t > B8 or tile_bytes(t) > budget:
            continue
        b_pad = _round_up(B, t)
        key = ((0 if b_pad // t >= 2 else 1), b_pad - B, -t)
        if best is None or key < best[0]:
            best = (key, t)
    t = best[1] if best is not None else 64
    if _round_up(B, t) // t < 2 and t >= 128:
        t //= 2          # guarantee 2 grid steps for v7x's second TensorCore
    return t


def mlp_forward(x, w1, b1, w2, b2, seed):
    """x: (B, img_dim) f32; w1: (img_dim, hid); b1: (hid,); w2: (hid, att); b2: (att,)."""
    B, img_dim = x.shape
    hid_dim = w1.shape[1]
    att_dim = w2.shape[1]

    # Lane-dense intermediates / outputs: pad feature dims to multiples of 128.
    hid_pad = _round_up(hid_dim, 128)
    att_pad = _round_up(att_dim, 128)
    tile_b = _choose_tile_b(B, img_dim, hid_pad, att_pad)
    B_pad = _round_up(B, tile_b)

    # Pre-cast to bf16 once in the wrapper; fold dropout rescale into w2.
    x_p = jnp.pad(x, ((0, B_pad - B), (0, 0))).astype(jnp.bfloat16)
    w1_p = jnp.pad(w1, ((0, 0), (0, hid_pad - hid_dim))).astype(jnp.bfloat16)
    b1_p = jnp.pad(b1, (0, hid_pad - hid_dim)).reshape(1, hid_pad).astype(jnp.float32)
    w2_p = jnp.pad(w2 * (1.0 / KEEP_PROB),
                   ((0, hid_pad - hid_dim), (0, att_pad - att_dim))).astype(jnp.bfloat16)
    b2_p = jnp.pad(b2, (0, att_pad - att_dim)).reshape(1, att_pad).astype(jnp.float32)
    seed_arr = jnp.asarray([seed], dtype=jnp.int32)

    grid = (B_pad // tile_b,)

    # Advisory cost estimate (bf16 weights/x, f32 biases/out).
    flops = 2 * B_pad * (img_dim * hid_pad + hid_pad * att_pad)
    transcendentals = B_pad * hid_pad
    bytes_accessed = (2 * B_pad * img_dim
                      + 2 * (img_dim * hid_pad + hid_pad * att_pad)
                      + 4 * (hid_pad + att_pad)
                      + 4 * B_pad * att_pad)

    # VMEM budget: resident bf16 weights / f32 biases (counted x2 in case the
    # single-buffer request is unsupported), double-buffered streamed tiles,
    # and f32 intermediates; 2x headroom, clamped under v7x's 64 MiB physical.
    resident = 2 * (img_dim * hid_pad + hid_pad * att_pad) + 4 * (hid_pad + att_pad)
    streamed = 2 * (2 * tile_b * img_dim + 4 * tile_b * att_pad)
    inter = 3 * 4 * tile_b * hid_pad
    vmem_need = 2 * resident + streamed + inter
    vmem_limit = int(min(max(2 * vmem_need, 16 << 20), 48 << 20))

    def run(single_buffer_resident):
        res_kw = ({"pipeline_mode": pl.Buffered(buffer_count=1)}
                  if single_buffer_resident else {})
        in_specs = [
            pl.BlockSpec((tile_b, img_dim), lambda i, s: (i, 0)),             # x tile
            pl.BlockSpec((img_dim, hid_pad), lambda i, s: (0, 0), **res_kw),  # w1 resident
            pl.BlockSpec((1, hid_pad), lambda i, s: (0, 0), **res_kw),        # b1 resident
            pl.BlockSpec((hid_pad, att_pad), lambda i, s: (0, 0), **res_kw),  # w2 resident
            pl.BlockSpec((1, att_pad), lambda i, s: (0, 0), **res_kw),        # b2 resident
        ]
        out = pl.pallas_call(
            _mlp_kernel,
            out_shape=jax.ShapeDtypeStruct((B_pad, att_pad), jnp.float32),
            grid_spec=pltpu.PrefetchScalarGridSpec(
                num_scalar_prefetch=1,                      # seed -> SMEM
                grid=grid,
                in_specs=in_specs,
                out_specs=pl.BlockSpec((tile_b, att_pad), lambda i, s: (i, 0)),
            ),
            compiler_params=pltpu.CompilerParams(
                dimension_semantics=("parallel",),          # shard batch tiles across TCs
                vmem_limit_bytes=vmem_limit,
            ),
            cost_estimate=pl.CostEstimate(flops=flops,
                                          transcendentals=transcendentals,
                                          bytes_accessed=bytes_accessed),
        )(seed_arr, x_p, w1_p, b1_p, w2_p, b2_p)
        return jax.block_until_ready(out)

    try:
        out_p = run(True)           # single-buffer the constant-index weight blocks
    except Exception:
        out_p = run(False)          # this JAX build rejects pipeline_mode -> default

    return out_p[:B, :att_dim]


def _reference_forward(x, w1, b1, w2, b2, seed, hid_pad):
    """Pure-JAX f32 reference using the identical deterministic dropout mask."""
    h = jnp.tanh(x @ w1 + b1)
    B, hid = h.shape
    row = jnp.arange(B, dtype=jnp.int32)[:, None]
    col = jnp.arange(hid, dtype=jnp.int32)[None, :]
    keep = _keep_mask(row * jnp.int32(hid_pad) + col, jnp.int32(seed))
    h = jnp.where(keep, h * (1.0 / KEEP_PROB), 0.0)
    return jnp.maximum(h @ w2 + b2, 0.0)


if __name__ == "__main__":
    # Small shapes consistent with the module: x is (batch, img_dim).
    batch, img_dim, hid_dim, att_dim = 8, 32, 64, 16

    key = jax.random.PRNGKey(0)
    kx, kw1, kb1, kw2, kb2 = jax.random.split(key, 5)

    x = jax.random.normal(kx, (batch, img_dim), dtype=jnp.float32)
    # PyTorch Linear stores (out, in); we build directly in (in, out) layout for x @ W.
    w1 = jax.random.normal(kw1, (img_dim, hid_dim), dtype=jnp.float32) * 0.1
    b1 = jax.random.normal(kb1, (hid_dim,), dtype=jnp.float32) * 0.1
    w2 = jax.random.normal(kw2, (hid_dim, att_dim), dtype=jnp.float32) * 0.1
    b2 = jax.random.normal(kb2, (att_dim,), dtype=jnp.float32) * 0.1

    seed = 1234
    out = mlp_forward(x, w1, b1, w2, b2, seed=seed)
    jax.block_until_ready(out)

    assert out.shape == (batch, att_dim)
    assert out.dtype == jnp.float32
    assert bool(jnp.all(out >= 0.0))  # ReLU output is non-negative

    # Compare against an f32 reference with the identical dropout mask
    # (generous tolerance: kernel matmuls use bf16 operands).
    ref = _reference_forward(x, w1, b1, w2, b2, seed, _round_up(hid_dim, 128))
    max_err = float(jnp.max(jnp.abs(out - ref)))
    assert max_err < 0.15, f"max abs error vs reference too large: {max_err}"

    print("KERNEL_OK")
</pallas_src>

<mosaic_0001>
module attributes {stable_mosaic.version = 11 : i64} {
  func.func @_mlp_kernel(%arg0: i32, %arg1: memref<1xi32, #tpu.memory_space<smem>>, %arg2: memref<8x32xbf16, #tpu.memory_space<vmem>>, %arg3: memref<32x128xbf16, #tpu.memory_space<vmem>>, %arg4: memref<1x128xf32, #tpu.memory_space<vmem>>, %arg5: memref<128x128xbf16, #tpu.memory_space<vmem>>, %arg6: memref<1x128xf32, #tpu.memory_space<vmem>>, %arg7: memref<8x128xf32, #tpu.memory_space<vmem>>) attributes {dimension_semantics = [#tpu.dimension_semantics<parallel>], iteration_bounds = array<i64: 1>, scalar_prefetch = 1 : i64, scratch_operands = 0 : i64, tpu.core_type = #tpu.core_type<tc>, window_params = [{transform_indices = @transform_0, window_bounds = array<i64: 8, 32>}, {pipeline_mode = #tpu.pipeline_mode<synchronous>, transform_indices = @transform_1, window_bounds = array<i64: 32, 128>}, {pipeline_mode = #tpu.pipeline_mode<synchronous>, transform_indices = @transform_2, window_bounds = array<i64: 1, 128>}, {pipeline_mode = #tpu.pipeline_mode<synchronous>, transform_indices = @transform_3, window_bounds = array<i64: 128, 128>}, {pipeline_mode = #tpu.pipeline_mode<synchronous>, transform_indices = @transform_4, window_bounds = array<i64: 1, 128>}, {transform_indices = @transform_5, window_bounds = array<i64: 8, 128>}]} {
    %c0 = arith.constant 0 : index
    %c0_0 = arith.constant 0 : index
    %0 = vector.load %arg2[%c0, %c0_0] : memref<8x32xbf16, #tpu.memory_space<vmem>>, vector<8x32xbf16>
    %c0_1 = arith.constant 0 : index
    %c0_2 = arith.constant 0 : index
    %1 = vector.load %arg3[%c0_1, %c0_2] : memref<32x128xbf16, #tpu.memory_space<vmem>>, vector<32x128xbf16>
    %cst = arith.constant dense<0.000000e+00> : vector<8x128xf32>
    %2 = tpu.matmul %0, %1, %cst {dimension_numbers = #tpu.dot_dimension_numbers<[1], [0], [0], [1], [0, 0, 1, 1], [], []>} : vector<8x32xbf16>, vector<32x128xbf16>, vector<8x128xf32> -> vector<8x128xf32>
    %c0_3 = arith.constant 0 : index
    %c0_4 = arith.constant 0 : index
    %3 = vector.load %arg4[%c0_3, %c0_4] : memref<1x128xf32, #tpu.memory_space<vmem>>, vector<1x128xf32>
    %4 = vector.broadcast %3 : vector<1x128xf32> to vector<8x128xf32>
    %5 = arith.addf %2, %4 : vector<8x128xf32>
    %6 = math.tanh %5 : vector<8x128xf32>
    %7 = tpu.iota {dimensions = array<i32: 0>} : vector<8x1xi32>
    %8 = tpu.iota {dimensions = array<i32: 1>} : vector<1x128xi32>
    %c8_i32 = arith.constant 8 : i32
    %9 = arith.muli %arg0, %c8_i32 : i32
    %10 = vector.broadcast %9 : i32 to vector<8x1xi32>
    %11 = arith.addi %7, %10 : vector<8x1xi32>
    %c128_i32 = arith.constant 128 : i32
    %12 = vector.broadcast %c128_i32 : i32 to vector<8x1xi32>
    %13 = arith.muli %11, %12 : vector<8x1xi32>
    %14 = vector.broadcast %13 : vector<8x1xi32> to vector<8x128xi32>
    %15 = vector.broadcast %8 : vector<1x128xi32> to vector<8x128xi32>
    %16 = arith.addi %14, %15 : vector<8x128xi32>
    %c0_5 = arith.constant 0 : index
    %17 = memref.load %arg1[%c0_5] : memref<1xi32, #tpu.memory_space<smem>>
    %c-1640531527_i32 = arith.constant -1640531527 : i32
    %18 = vector.broadcast %c-1640531527_i32 : i32 to vector<8x128xi32>
    %19 = arith.muli %16, %18 : vector<8x128xi32>
    %c-1028477387_i32 = arith.constant -1028477387 : i32
    %20 = arith.muli %17, %c-1028477387_i32 : i32
    %21 = vector.broadcast %20 : i32 to vector<8x128xi32>
    %22 = arith.addi %19, %21 : vector<8x128xi32>
    %c16_i32 = arith.constant 16 : i32
    %23 = vector.broadcast %c16_i32 : i32 to vector<8x128xi32>
    %24 = arith.shrui %22, %23 : vector<8x128xi32>
    %25 = arith.xori %22, %24 : vector<8x128xi32>
    %c-2048144789_i32 = arith.constant -2048144789 : i32
    %26 = vector.broadcast %c-2048144789_i32 : i32 to vector<8x128xi32>
    %27 = arith.muli %25, %26 : vector<8x128xi32>
    %c13_i32 = arith.constant 13 : i32
    %28 = vector.broadcast %c13_i32 : i32 to vector<8x128xi32>
    %29 = arith.shrui %27, %28 : vector<8x128xi32>
    %30 = arith.xori %27, %29 : vector<8x128xi32>
    %c-1028477387_i32_6 = arith.constant -1028477387 : i32
    %31 = vector.broadcast %c-1028477387_i32_6 : i32 to vector<8x128xi32>
    %32 = arith.muli %30, %31 : vector<8x128xi32>
    %c16_i32_7 = arith.constant 16 : i32
    %33 = vector.broadcast %c16_i32_7 : i32 to vector<8x128xi32>
    %34 = arith.shrui %32, %33 : vector<8x128xi32>
    %35 = arith.xori %32, %34 : vector<8x128xi32>
    %c16777215_i32 = arith.constant 16777215 : i32
    %36 = vector.broadcast %c16777215_i32 : i32 to vector<8x128xi32>
    %37 = arith.andi %35, %36 : vector<8x128xi32>
    %c3355443_i32 = arith.constant 3355443 : i32
    %38 = vector.broadcast %c3355443_i32 : i32 to vector<8x128xi32>
    %39 = arith.cmpi slt, %37, %38 : vector<8x128xi32>
    %40 = arith.truncf %6 : vector<8x128xf32> to vector<8x128xbf16>
    %cst_8 = arith.constant 0.000000e+00 : bf16
    %41 = vector.broadcast %cst_8 : bf16 to vector<8x128xbf16>
    %42 = arith.select %39, %40, %41 : vector<8x128xi1>, vector<8x128xbf16>
    %c0_9 = arith.constant 0 : index
    %c0_10 = arith.constant 0 : index
    %43 = vector.load %arg5[%c0_9, %c0_10] : memref<128x128xbf16, #tpu.memory_space<vmem>>, vector<128x128xbf16>
    %cst_11 = arith.constant dense<0.000000e+00> : vector<8x128xf32>
    %44 = tpu.matmul %42, %43, %cst_11 {dimension_numbers = #tpu.dot_dimension_numbers<[1], [0], [0], [1], [0, 0, 1, 1], [], []>} : vector<8x128xbf16>, vector<128x128xbf16>, vector<8x128xf32> -> vector<8x128xf32>
    %c0_12 = arith.constant 0 : index
    %c0_13 = arith.constant 0 : index
    %45 = vector.load %arg6[%c0_12, %c0_13] : memref<1x128xf32, #tpu.memory_space<vmem>>, vector<1x128xf32>
    %46 = vector.broadcast %45 : vector<1x128xf32> to vector<8x128xf32>
    %47 = arith.addf %44, %46 : vector<8x128xf32>
    %cst_14 = arith.constant 0.000000e+00 : f32
    %48 = vector.broadcast %cst_14 : f32 to vector<8x128xf32>
    %49 = arith.maximumf %47, %48 : vector<8x128xf32>
    %c0_15 = arith.constant 0 : index
    %c0_16 = arith.constant 0 : index
    %50 = vector.load %arg7[%c0_15, %c0_16] : memref<8x128xf32, #tpu.memory_space<vmem>>, vector<8x128xf32>
    tpu.vector_store %arg7[%c0_15, %c0_16], %49 {strides = array<i32>} : memref<8x128xf32, #tpu.memory_space<vmem>>, vector<8x128xf32>,
    return
  }
  func.func @transform_0(%arg0: i32, %arg1: memref<1xi32, #tpu.memory_space<smem>>) -> (i32, i32) {
    %c0_i32 = arith.constant 0 : i32
    %c0_i32_0 = arith.constant 0 : i32
    return %arg0, %c0_i32 : i32, i32
  }
  func.func @transform_1(%arg0: i32, %arg1: memref<1xi32, #tpu.memory_space<smem>>) -> (i32, i32) {
    %c0_i32 = arith.constant 0 : i32
    %c0_i32_0 = arith.constant 0 : i32
    %c0_i32_1 = arith.constant 0 : i32
    return %c0_i32, %c0_i32_0 : i32, i32
  }
  func.func @transform_2(%arg0: i32, %arg1: memref<1xi32, #tpu.memory_space<smem>>) -> (i32, i32) {
    %c0_i32 = arith.constant 0 : i32
    %c0_i32_0 = arith.constant 0 : i32
    %c0_i32_1 = arith.constant 0 : i32
    return %c0_i32, %c0_i32_0 : i32, i32
  }
  func.func @transform_3(%arg0: i32, %arg1: memref<1xi32, #tpu.memory_space<smem>>) -> (i32, i32) {
    %c0_i32 = arith.constant 0 : i32
    %c0_i32_0 = arith.constant 0 : i32
    %c0_i32_1 = arith.constant 0 : i32
    return %c0_i32, %c0_i32_0 : i32, i32
  }
  func.func @transform_4(%arg0: i32, %arg1: memref<1xi32, #tpu.memory_space<smem>>) -> (i32, i32) {
    %c0_i32 = arith.constant 0 : i32
    %c0_i32_0 = arith.constant 0 : i32
    %c0_i32_1 = arith.constant 0 : i32
    return %c0_i32, %c0_i32_0 : i32, i32
  }
  func.func @transform_5(%arg0: i32, %arg1: memref<1xi32, #tpu.memory_space<smem>>) -> (i32, i32) {
    %c0_i32 = arith.constant 0 : i32
    %c0_i32_0 = arith.constant 0 : i32
    return %arg0, %c0_i32 : i32, i32
  }
}

module attributes {stable_mosaic.version = 11 : i64} {
  func.func @_mlp_kernel(%arg0: i32, %arg1: memref<1xi32, #tpu.memory_space<smem>>, %arg2: memref<8x32xbf16, #tpu.memory_space<vmem>>, %arg3: memref<32x128xbf16, #tpu.memory_space<vmem>>, %arg4: memref<1x128xf32, #tpu.memory_space<vmem>>, %arg5: memref<128x128xbf16, #tpu.memory_space<vmem>>, %arg6: memref<1x128xf32, #tpu.memory_space<vmem>>, %arg7: memref<8x128xf32, #tpu.memory_space<vmem>>) attributes {dimension_semantics = [#tpu.dimension_semantics<parallel>], iteration_bounds = array<i64: 1>, scalar_prefetch = 1 : i64, scratch_operands = 0 : i64, tpu.core_type = #tpu.core_type<tc>, window_params = [{transform_indices = @transform_0, window_bounds = array<i64: 8, 32>}, {pipeline_mode = #tpu.pipeline_mode<synchronous>, transform_indices = @transform_1, window_bounds = array<i64: 32, 128>}, {pipeline_mode = #tpu.pipeline_mode<synchronous>, transform_indices = @transform_2, window_bounds = array<i64: 1, 128>}, {pipeline_mode = #tpu.pipeline_mode<synchronous>, transform_indices = @transform_3, window_bounds = array<i64: 128, 128>}, {pipeline_mode = #tpu.pipeline_mode<synchronous>, transform_indices = @transform_4, window_bounds = array<i64: 1, 128>}, {transform_indices = @transform_5, window_bounds = array<i64: 8, 128>}]} {
    %c0 = arith.constant 0 : index
    %c0_0 = arith.constant 0 : index
    %0 = vector.load %arg2[%c0, %c0_0] : memref<8x32xbf16, #tpu.memory_space<vmem>>, vector<8x32xbf16>
    %c0_1 = arith.constant 0 : index
    %c0_2 = arith.constant 0 : index
    %1 = vector.load %arg3[%c0_1, %c0_2] : memref<32x128xbf16, #tpu.memory_space<vmem>>, vector<32x128xbf16>
    %cst = arith.constant dense<0.000000e+00> : vector<8x128xf32>
    %2 = tpu.matmul %0, %1, %cst {dimension_numbers = #tpu.dot_dimension_numbers<[1], [0], [0], [1], [0, 0, 1, 1], [], []>} : vector<8x32xbf16>, vector<32x128xbf16>, vector<8x128xf32> -> vector<8x128xf32>
    %c0_3 = arith.constant 0 : index
    %c0_4 = arith.constant 0 : index
    %3 = vector.load %arg4[%c0_3, %c0_4] : memref<1x128xf32, #tpu.memory_space<vmem>>, vector<1x128xf32>
    %4 = vector.broadcast %3 : vector<1x128xf32> to vector<8x128xf32>
    %5 = arith.addf %2, %4 : vector<8x128xf32>
    %6 = math.tanh %5 : vector<8x128xf32>
    %7 = tpu.iota {dimensions = array<i32: 0>} : vector<8x1xi32>
    %8 = tpu.iota {dimensions = array<i32: 1>} : vector<1x128xi32>
    %c8_i32 = arith.constant 8 : i32
    %9 = arith.muli %arg0, %c8_i32 : i32
    %10 = vector.broadcast %9 : i32 to vector<8x1xi32>
    %11 = arith.addi %7, %10 : vector<8x1xi32>
    %c128_i32 = arith.constant 128 : i32
    %12 = vector.broadcast %c128_i32 : i32 to vector<8x1xi32>
    %13 = arith.muli %11, %12 : vector<8x1xi32>
    %14 = vector.broadcast %13 : vector<8x1xi32> to vector<8x128xi32>
    %15 = vector.broadcast %8 : vector<1x128xi32> to vector<8x128xi32>
    %16 = arith.addi %14, %15 : vector<8x128xi32>
    %c0_5 = arith.constant 0 : index
    %17 = memref.load %arg1[%c0_5] : memref<1xi32, #tpu.memory_space<smem>>
    %c-1640531527_i32 = arith.constant -1640531527 : i32
    %18 = vector.broadcast %c-1640531527_i32 : i32 to vector<8x128xi32>
    %19 = arith.muli %16, %18 : vector<8x128xi32>
    %c-1028477387_i32 = arith.constant -1028477387 : i32
    %20 = arith.muli %17, %c-1028477387_i32 : i32
    %21 = vector.broadcast %20 : i32 to vector<8x128xi32>
    %22 = arith.addi %19, %21 : vector<8x128xi32>
    %c16_i32 = arith.constant 16 : i32
    %23 = vector.broadcast %c16_i32 : i32 to vector<8x128xi32>
    %24 = arith.shrui %22, %23 : vector<8x128xi32>
    %25 = arith.xori %22, %24 : vector<8x128xi32>
    %c-2048144789_i32 = arith.constant -2048144789 : i32
    %26 = vector.broadcast %c-2048144789_i32 : i32 to vector<8x128xi32>
    %27 = arith.muli %25, %26 : vector<8x128xi32>
    %c13_i32 = arith.constant 13 : i32
    %28 = vector.broadcast %c13_i32 : i32 to vector<8x128xi32>
    %29 = arith.shrui %27, %28 : vector<8x128xi32>
    %30 = arith.xori %27, %29 : vector<8x128xi32>
    %c-1028477387_i32_6 = arith.constant -1028477387 : i32
    %31 = vector.broadcast %c-1028477387_i32_6 : i32 to vector<8x128xi32>
    %32 = arith.muli %30, %31 : vector<8x128xi32>
    %c16_i32_7 = arith.constant 16 : i32
    %33 = vector.broadcast %c16_i32_7 : i32 to vector<8x128xi32>
    %34 = arith.shrui %32, %33 : vector<8x128xi32>
    %35 = arith.xori %32, %34 : vector<8x128xi32>
    %c16777215_i32 = arith.constant 16777215 : i32
    %36 = vector.broadcast %c16777215_i32 : i32 to vector<8x128xi32>
    %37 = arith.andi %35, %36 : vector<8x128xi32>
    %c3355443_i32 = arith.constant 3355443 : i32
    %38 = vector.broadcast %c3355443_i32 : i32 to vector<8x128xi32>
    %39 = arith.cmpi slt, %37, %38 : vector<8x128xi32>
    %40 = arith.truncf %6 : vector<8x128xf32> to vector<8x128xbf16>
    %cst_8 = arith.constant 0.000000e+00 : bf16
    %41 = vector.broadcast %cst_8 : bf16 to vector<8x128xbf16>
    %42 = arith.select %39, %40, %41 : vector<8x128xi1>, vector<8x128xbf16>
    %c0_9 = arith.constant 0 : index
    %c0_10 = arith.constant 0 : index
    %43 = vector.load %arg5[%c0_9, %c0_10] : memref<128x128xbf16, #tpu.memory_space<vmem>>, vector<128x128xbf16>
    %cst_11 = arith.constant dense<0.000000e+00> : vector<8x128xf32>
    %44 = tpu.matmul %42, %43, %cst_11 {dimension_numbers = #tpu.dot_dimension_numbers<[1], [0], [0], [1], [0, 0, 1, 1], [], []>} : vector<8x128xbf16>, vector<128x128xbf16>, vector<8x128xf32> -> vector<8x128xf32>
    %c0_12 = arith.constant 0 : index
    %c0_13 = arith.constant 0 : index
    %45 = vector.load %arg6[%c0_12, %c0_13] : memref<1x128xf32, #tpu.memory_space<vmem>>, vector<1x128xf32>
    %46 = vector.broadcast %45 : vector<1x128xf32> to vector<8x128xf32>
    %47 = arith.addf %44, %46 : vector<8x128xf32>
    %cst_14 = arith.constant 0.000000e+00 : f32
    %48 = vector.broadcast %cst_14 : f32 to vector<8x128xf32>
    %49 = arith.maximumf %47, %48 : vector<8x128xf32>
    %c0_15 = arith.constant 0 : index
    %c0_16 = arith.constant 0 : index
    %50 = vector.load %arg7[%c0_15, %c0_16] : memref<8x128xf32, #tpu.memory_space<vmem>>, vector<8x128xf32>
    tpu.vector_store %arg7[%c0_15, %c0_16], %49 {strides = array<i32>} : memref<8x128xf32, #tpu.memory_space<vmem>>, vector<8x128xf32>,
    return
  }
  func.func @transform_0(%arg0: i32, %arg1: memref<1xi32, #tpu.memory_space<smem>>) -> (i32, i32) {
    %c0_i32 = arith.constant 0 : i32
    %c0_i32_0 = arith.constant 0 : i32
    return %arg0, %c0_i32 : i32, i32
  }
  func.func @transform_1(%arg0: i32, %arg1: memref<1xi32, #tpu.memory_space<smem>>) -> (i32, i32) {
    %c0_i32 = arith.constant 0 : i32
    %c0_i32_0 = arith.constant 0 : i32
    %c0_i32_1 = arith.constant 0 : i32
    return %c0_i32, %c0_i32_0 : i32, i32
  }
  func.func @transform_2(%arg0: i32, %arg1: memref<1xi32, #tpu.memory_space<smem>>) -> (i32, i32) {
    %c0_i32 = arith.constant 0 : i32
    %c0_i32_0 = arith.constant 0 : i32
    %c0_i32_1 = arith.constant 0 : i32
    return %c0_i32, %c0_i32_0 : i32, i32
  }
  func.func @transform_3(%arg0: i32, %arg1: memref<1xi32, #tpu.memory_space<smem>>) -> (i32, i32) {
    %c0_i32 = arith.constant 0 : i32
    %c0_i32_0 = arith.constant 0 : i32
    %c0_i32_1 = arith.constant 0 : i32
    return %c0_i32, %c0_i32_0 : i32, i32
  }
  func.func @transform_4(%arg0: i32, %arg1: memref<1xi32, #tpu.memory_space<smem>>) -> (i32, i32) {
    %c0_i32 = arith.constant 0 : i32
    %c0_i32_0 = arith.constant 0 : i32
    %c0_i32_1 = arith.constant 0 : i32
    return %c0_i32, %c0_i32_0 : i32, i32
  }
  func.func @transform_5(%arg0: i32, %arg1: memref<1xi32, #tpu.memory_space<smem>>) -> (i32, i32) {
    %c0_i32 = arith.constant 0 : i32
    %c0_i32_0 = arith.constant 0 : i32
    return %arg0, %c0_i32 : i32, i32
  }
}

</mosaic_0001>

<bundles_post_ra>
// kernel: tpu_custom_call.1
= control target key start
LH: loop header
LB: loop body
LE: loop exit
PB: predicated region body
PF: predicated region fallthrough
CT: control target
= control target key end

     0   :  { %12 = vsyncpa [#allocation5], 0  ;;  %s561_s0 = inlined_call_operand.<no memory space> [shape: s32[1], index: 0, kind: input, shape index: {}]   ;;  %s562_s1 = inlined_call_operand.hbm [shape: bf16[8,32], index: 1, kind: input, shape index: {}]   ;;  %s563_s2 = inlined_call_operand.hbm [shape: bf16[32,128], index: 2, kind: input, shape index: {}]   ;;  %s564_s3 = inlined_call_operand.vmem [shape: f32[1,128], index: 3, kind: input, shape index: {}]   ;;  %s565_s4 = inlined_call_operand.hbm [shape: bf16[128,128], index: 4, kind: input, shape index: {}]   ;;  %s566_s5 = inlined_call_operand.vmem [shape: f32[1,128], index: 5, kind: input, shape index: {}]   ;;  %s567_s6 = inlined_call_operand.hbm [shape: f32[8,128], index: 6, kind: output, shape index: {}]  }
   0x1   :  { %13 = vsyncpa [#allocation8], 0 }
   0x2   :  { %14 = vsyncpa [#allocation6], 0  ;;  %s455_s21 = smov [#allocation7]   ;;  %s361_s25 = scalar_lea.hbm %s563_s2, 256 }
   0x3   :  { %s30_s22 = sshll.u32 %s455_s21, 4  ;;  %p362_p0 = scmp.ne.s32.totalorder %s563_s2, %s361_s25  ;;  %s31_s22 = int_to_ptr.vmem [resolvable:$true] %s30_s22 }
   0x4   :  { %p365_p1 = scmp.lt.u32.totalorder %s361_s25, %s563_s2 }
   0x6   :  { %p367_p2 = pnand %p365_p1, %p362_p0 }
   0x8   :  { %370 = shalt.err (!%p367_p2)
}
   0x9   :  { %s371_s30 = scalar_lea.vmem %s31_s22, 256  ;;  %p376_p4 = scmp.lt.s32.totalorder %s31_s22, %s31_s22 }
   0xa   :  { %p372_p3 = scmp.ne.s32.totalorder %s31_s22, %s371_s30  ;;  %p377_p5 = scmp.lt.s32.totalorder %s371_s30, %s371_s30 }
   0xc   :  { %p378_p6 = por %p377_p5, %p376_p4 }
   0xe   :  { %p379_p7 = pnand %p378_p6, %p372_p3 }
  0x10   :  { %382 = shalt.err (!%p379_p7)
}
  0x11   :  { %s456_s7 = smov 64   ;;  %s457_s8 = smov 4  }
  0x12   :  { %36 = dma.hbm_to_vmem [thread:$0]  %s563_s2, 256, %s31_s22, [#allocation8], %s456_s7, %s456_s7, %s457_s8  }
  0x13   :  { %s458_s11 = smov [#allocation4]   ;;  %s459_s13 = smov [#allocation9]  }
  0x14   :  { %s21_s12 = sshll.u32 %s458_s11, 4  ;;  %s44_s14 = sshll.u32 %s459_s13, 4  ;;  %s22_s12 = int_to_ptr.vmem [resolvable:$true] %s21_s12  ;;  %s45_s14 = int_to_ptr.vmem [resolvable:$true] %s44_s14 }
  0x15   :  { %s383_s17 = scalar_lea.hbm %s562_s1, 64 }
  0x16   :  { %p384_p8 = scmp.ne.s32.totalorder %s562_s1, %s383_s17  ;;  %p387_p9 = scmp.lt.u32.totalorder %s383_s17, %s562_s1 }
  0x18   :  { %p389_p10 = pnand %p387_p9, %p384_p8 }
  0x1a   :  { %392 = shalt.err (!%p389_p10)
}
  0x1b   :  { %s393_s2 = scalar_lea.vmem %s22_s12, 64  ;;  %p398_p12 = scmp.lt.s32.totalorder %s22_s12, %s22_s12 }
  0x1c   :  { %p394_p11 = scmp.ne.s32.totalorder %s22_s12, %s393_s2  ;;  %p399_p13 = scmp.lt.s32.totalorder %s393_s2, %s393_s2 }
  0x1e   :  { %p400_p0 = por %p399_p13, %p398_p12 }
  0x20   :  { %p401_p1 = pnand %p400_p0, %p394_p11 }
  0x22   :  { %404 = shalt.err (!%p401_p1)
}
  0x23   :  { %24 = dma.hbm_to_vmem [thread:$0]  %s562_s1, 64, %s22_s12, [#allocation5]  }
  0x24   :  { %s405_s26 = scalar_lea.hbm %s565_s4, 1024 }
  0x25   :  { %p406_p2 = scmp.ne.s32.totalorder %s565_s4, %s405_s26  ;;  %p409_p3 = scmp.lt.u32.totalorder %s405_s26, %s565_s4 }
  0x27   :  { %p411_p4 = pnand %p409_p3, %p406_p2 }
  0x29   :  { %414 = shalt.err (!%p411_p4)
}
  0x2a   :  { %s415_s9 = scalar_lea.vmem %s45_s14, 1024  ;;  %p420_p6 = scmp.lt.s32.totalorder %s45_s14, %s45_s14 }
  0x2b   :  { %p416_p5 = scmp.ne.s32.totalorder %s45_s14, %s415_s9  ;;  %p421_p7 = scmp.lt.s32.totalorder %s415_s9, %s415_s9 }
  0x2d   :  { %p422_p8 = por %p421_p7, %p420_p6 }
  0x2f   :  { %p423_p9 = pnand %p422_p8, %p416_p5 }
  0x31   :  { %426 = shalt.err (!%p423_p9)
}
  0x32   :  { %50 = dma.hbm_to_vmem [thread:$0]  %s565_s4, 1024, %s45_s14, [#allocation8], %s456_s7, %s456_s7, %s457_s8  }
  0x33   :  { %449 = dma.done.wait [#allocation5], 64  }
  0x34   :  { %450 = vsyncadd [#allocation5], 4294967232 }
  0x35   :  { %451 = dma.done.wait [#allocation8], 1280  }
  0x36   :  { %452 = vsyncadd [#allocation8], 4294966016  ;;  %v460_v0 = vmov 0.0   ;;  %vm461_vm0 = vmmov 0   ;;  %v349_v1 = vld [vmem:[#allocation7] sm:$0xff]   ;;  %v350_v2 = vld [vmem:[#allocation7 + $0x8] sm:$0xff]   ;;  %v132_v12 = vlaneseq }
  0x37   :  { %313 = vmatprep.subr.bf16.mxu0 %v460_v0  ;;  %317 = vmatprep.mubr.msk.bf16.mxu0 %vm461_vm0, %v460_v0  ;;  %v351_v3 = vld [vmem:[#allocation9] sm:$0xff]   ;;  %v352_v4 = vld [vmem:[#allocation9 + $0x8] sm:$0xff]   ;;  %vm87_vm1 = vcmask 261120   ;;  %v353_v6 = vld [vmem:[#allocation9 + $0x10] sm:$0xff]   ;;  %s143_s8 = smul.u32 3266489909, %s561_s0 }
  0x38   :  { %321 = vmatprep.subr.bf16.mxu1 %v460_v0  ;;  %337 = vmatprep.mubr.msk.bf16.mxu1 %vm461_vm0, %v460_v0  ;;  %v63_v5 = vld [vmem:[#allocation4] sm:$0xf]  ;;  %v354_v7 = vld [vmem:[#allocation9 + $0x18] sm:$0xff]   ;;  %v355_v8 = vld [vmem:[#allocation9 + $0x20] sm:$0xff]   ;;  %v133_v13 = vshrl.u32 %v132_v12, 7  ;;  %v135_v14 = vand.u32 127, %v132_v12 }
  0x39   :  { %314 = vmatpush3.bf16.msra.mxu0 %v349_v1  ;;  %322 = vmatpush3.bf16.msra.mxu1 %v351_v3  ;;  %v356_v9 = vld [vmem:[#allocation9 + $0x28] sm:$0xff]   ;;  %v357_v10 = vld [vmem:[#allocation9 + $0x30] sm:$0xff]   ;;  %v358_v11 = vld [vmem:[#allocation9 + $0x38] sm:$0xff]   ;;  %v144_v18 = vstv %s143_s8 }
  0x3a   :  { %315 = vmatprep.subr.bf16.mxu0 %v460_v0  ;;  %323 = vmatprep.subr.bf16.mxu1 %v460_v0  ;;  %v139_v15 = vmul.u32 128, %v133_v13  ;;  %v288_v26 = vld [vmem:[%s564_s3] ss:$0 sm:$0xff]  ;;  %s462_s3 = smov [#allocation10]  }
  0x3b   :  { %v292_v38 = vld [vmem:[%s566_s5] ss:$0 sm:$0xff]  ;;  %s278_s14 = sshll.u32 %s462_s3, 4  ;;  %s279_s14 = int_to_ptr.vmem [resolvable:$true] %s278_s14 }
  0x3c   :  { %v140_v16 = vadd.s32 %v139_v15, %v135_v14  ;;  %s427_s15 = scalar_lea.vmem %s279_s14, 128  ;;  %p432_p11 = scmp.lt.s32.totalorder %s279_s14, %s279_s14 }
  0x3d   :  { %316 = vmatpush3.bf16.msra.mxu0 %v350_v2  ;;  %324 = vmatpush3.bf16.msra.mxu1 %v352_v4  ;;  %p428_p10 = scmp.ne.s32.totalorder %s279_s14, %s427_s15  ;;  %p433_p12 = scmp.lt.s32.totalorder %s427_s15, %s427_s15 }
  0x3e   :  { %325 = vmatprep.subr.bf16.mxu1 %v460_v0  ;;  %v142_v17 = vmul.u32 2654435769, %v140_v16 }
  0x3f   :  { %p434_p13 = por %p433_p12, %p432_p11 }
  0x40   :  { %318 = vmatmul.mubr.msk.bf16.vlgmr.msra.gmra.mrb[0].mxu0 %vm87_vm1, %v63_v5  ;;  %v145_v19 = vadd.s32 %v144_v18, %v142_v17 }
  0x41   :  { %326 = vmatpush3.bf16.msra.mxu1 %v353_v6  ;;  %p435_p0 = pnand %p434_p13, %p428_p10 }
  0x42   :  { %327 = vmatprep.subr.bf16.mxu1 %v460_v0  ;;  %v146_v20 = vshrl.u32 %v145_v19, 16 }
  0x44   :  { %v147_v21 = vxor.u32 %v146_v20, %v145_v19 }
  0x45   :  { %328 = vmatpush3.bf16.msra.mxu1 %v354_v7 }
  0x46   :  { %329 = vmatprep.subr.bf16.mxu1 %v460_v0  ;;  %v148_v22 = vmul.u32 2246822507, %v147_v21 }
  0x48   :  { %v149_v23 = vshrl.u32 %v148_v22, 13 }
  0x49   :  { %330 = vmatpush3.bf16.msra.mxu1 %v355_v8 }
  0x4a   :  { %331 = vmatprep.subr.bf16.mxu1 %v460_v0  ;;  %v150_v24 = vxor.u32 %v149_v23, %v148_v22 }
  0x4c   :  { %v151_v25 = vmul.u32 3266489909, %v150_v24 }
  0x4d   :  { %332 = vmatpush3.bf16.msra.mxu1 %v356_v9 }
  0x4e   :  { %333 = vmatprep.subr.bf16.mxu1 %v460_v0  ;;  %v152_v27 = vshrl.u32 %v151_v25, 16 }
  0x50   :  { %v153_v32 = vxor.u32 %v152_v27, %v151_v25 }
  0x51   :  { %334 = vmatpush3.bf16.msra.mxu1 %v357_v10 }
  0x52   :  { %335 = vmatprep.subr.bf16.mxu1 %v460_v0  ;;  %v154_v34 = vand.u32 16777215, %v153_v32 }
  0x54   :  { %vm155_vm2 = vcmp.lt.s32.totalorder %v154_v34, 3355443 }
  0x55   :  { %336 = vmatpush3.bf16.msra.mxu1 %v358_v11  ;;  %vm157_vm3 = vmpackc.low %vm155_vm2, %vm155_vm2 }
 0x113   :  { %v125_v28 = vpop.f32.mrb[0].mxu0 }
 0x114   :  { %v126_v29 = vadd.f32 %v288_v26, %v125_v28  ;;  %v319_v30 = vpop.f32.mrb[1].mxu0 }
 0x115   :  { %v128_v31 = vpop.f32.mrb[2].mxu0 }
 0x116   :  { %359 = vtanh.f32 %v126_v29  ;;  %v320_v33 = vpop.f32.mrb[3].mxu0 }
 0x120   :  { %v360_v35 = vpop.eup %359 }
 0x121   :  { %v156_v36 = vpack.c.bf16 %v360_v35, %v360_v35 }
 0x123   :  { %v158_v37 = vsel %vm157_vm3, %v156_v36, 0 }
 0x124   :  { %338 = vmatmul.mubr.bf16.vlgmr.msra.gmra.mrb[0].mxu1 %v158_v37 }
 0x1f7   :  { %v264_v39 = vpop.f32.mrb[0].mxu1 }
 0x1f8   :  { %v265_v40 = vadd.f32 %v292_v38, %v264_v39  ;;  %v339_v41 = vpop.f32.mrb[1].mxu1 }
 0x1f9   :  { %v267_v42 = vpop.f32.mrb[2].mxu1 }
 0x1fa   :  { %v270_v43 = vmax.f32 %v265_v40, 0.0  ;;  %v340_v44 = vpop.f32.mrb[3].mxu1 }
 0x1fc   :  { %271 = vst [vmem:[#allocation10] sm:$0xff] %v270_v43 }
 0x1fd   :  { %438 = shalt.err (!%p435_p0)
}
 0x1fe   :  { %s439_s5 = scalar_lea.hbm %s567_s6, 128 }
 0x1ff   :  { %p440_p1 = scmp.ne.s32.totalorder %s567_s6, %s439_s5  ;;  %p443_p2 = scmp.lt.u32.totalorder %s439_s5, %s567_s6 }
 0x201   :  { %p445_p3 = pnand %p443_p2, %p440_p1 }
 0x203   :  { %448 = shalt.err (!%p445_p3)
}
 0x204   :  { %281 = dma.vmem_to_hbm [thread:$0]  %s279_s14, 128, %s567_s6, [#allocation6]  }
 0x205   :  { %453 = dma.done.wait [#allocation6], 128  }
 0x206   :  { %454 = vsyncadd [#allocation6], 4294967168 }
 0x207   :  { %285 = vsyncpa [#allocation5], 1 }
 0x208   :  { %286 = vsyncpa [#allocation8], 1 }
 0x209   :  { %287 = vsyncpa [#allocation6], 1 }

// kernel: tpu_custom_call.1
= control target key start
LH: loop header
LB: loop body
LE: loop exit
PB: predicated region body
PF: predicated region fallthrough
CT: control target
= control target key end

     0   :  { %12 = vsyncpa [#allocation5], 0  ;;  %s561_s0 = inlined_call_operand.<no memory space> [shape: s32[1], index: 0, kind: input, shape index: {}]   ;;  %s562_s1 = inlined_call_operand.hbm [shape: bf16[8,32], index: 1, kind: input, shape index: {}]   ;;  %s563_s2 = inlined_call_operand.hbm [shape: bf16[32,128], index: 2, kind: input, shape index: {}]   ;;  %s564_s3 = inlined_call_operand.vmem [shape: f32[1,128], index: 3, kind: input, shape index: {}]   ;;  %s565_s4 = inlined_call_operand.hbm [shape: bf16[128,128], index: 4, kind: input, shape index: {}]   ;;  %s566_s5 = inlined_call_operand.vmem [shape: f32[1,128], index: 5, kind: input, shape index: {}]   ;;  %s567_s6 = inlined_call_operand.hbm [shape: f32[8,128], index: 6, kind: output, shape index: {}]  }
   0x1   :  { %13 = vsyncpa [#allocation8], 0 }
   0x2   :  { %14 = vsyncpa [#allocation6], 0  ;;  %s455_s21 = smov [#allocation7]   ;;  %s361_s25 = scalar_lea.hbm %s563_s2, 256 }
   0x3   :  { %s30_s22 = sshll.u32 %s455_s21, 4  ;;  %p362_p0 = scmp.ne.s32.totalorder %s563_s2, %s361_s25  ;;  %s31_s22 = int_to_ptr.vmem [resolvable:$true] %s30_s22 }
   0x4   :  { %p365_p1 = scmp.lt.u32.totalorder %s361_s25, %s563_s2 }
   0x6   :  { %p367_p2 = pnand %p365_p1, %p362_p0 }
   0x8   :  { %370 = shalt.err (!%p367_p2)
}
   0x9   :  { %s371_s30 = scalar_lea.vmem %s31_s22, 256  ;;  %p376_p4 = scmp.lt.s32.totalorder %s31_s22, %s31_s22 }
   0xa   :  { %p372_p3 = scmp.ne.s32.totalorder %s31_s22, %s371_s30  ;;  %p377_p5 = scmp.lt.s32.totalorder %s371_s30, %s371_s30 }
   0xc   :  { %p378_p6 = por %p377_p5, %p376_p4 }
   0xe   :  { %p379_p7 = pnand %p378_p6, %p372_p3 }
  0x10   :  { %382 = shalt.err (!%p379_p7)
}
  0x11   :  { %s456_s7 = smov 64   ;;  %s457_s8 = smov 4  }
  0x12   :  { %36 = dma.hbm_to_vmem [thread:$0]  %s563_s2, 256, %s31_s22, [#allocation8], %s456_s7, %s456_s7, %s457_s8  }
  0x13   :  { %s458_s11 = smov [#allocation4]   ;;  %s459_s13 = smov [#allocation9]  }
  0x14   :  { %s21_s12 = sshll.u32 %s458_s11, 4  ;;  %s44_s14 = sshll.u32 %s459_s13, 4  ;;  %s22_s12 = int_to_ptr.vmem [resolvable:$true] %s21_s12  ;;  %s45_s14 = int_to_ptr.vmem [resolvable:$true] %s44_s14 }
  0x15   :  { %s383_s17 = scalar_lea.hbm %s562_s1, 64 }
  0x16   :  { %p384_p8 = scmp.ne.s32.totalorder %s562_s1, %s383_s17  ;;  %p387_p9 = scmp.lt.u32.totalorder %s383_s17, %s562_s1 }
  0x18   :  { %p389_p10 = pnand %p387_p9, %p384_p8 }
  0x1a   :  { %392 = shalt.err (!%p389_p10)
}
  0x1b   :  { %s393_s2 = scalar_lea.vmem %s22_s12, 64  ;;  %p398_p12 = scmp.lt.s32.totalorder %s22_s12, %s22_s12 }
  0x1c   :  { %p394_p11 = scmp.ne.s32.totalorder %s22_s12, %s393_s2  ;;  %p399_p13 = scmp.lt.s32.totalorder %s393_s2, %s393_s2 }
  0x1e   :  { %p400_p0 = por %p399_p13, %p398_p12 }
  0x20   :  { %p401_p1 = pnand %p400_p0, %p394_p11 }
  0x22   :  { %404 = shalt.err (!%p401_p1)
}
  0x23   :  { %24 = dma.hbm_to_vmem [thread:$0]  %s562_s1, 64, %s22_s12, [#allocation5]  }
  0x24   :  { %s405_s26 = scalar_lea.hbm %s565_s4, 1024 }
  0x25   :  { %p406_p2 = scmp.ne.s32.totalorder %s565_s4, %s405_s26  ;;  %p409_p3 = scmp.lt.u32.totalorder %s405_s26, %s565_s4 }
  0x27   :  { %p411_p4 = pnand %p409_p3, %p406_p2 }
  0x29   :  { %414 = shalt.err (!%p411_p4)
}
  0x2a   :  { %s415_s9 = scalar_lea.vmem %s45_s14, 1024  ;;  %p420_p6 = scmp.lt.s32.totalorder %s45_s14, %s45_s14 }
  0x2b   :  { %p416_p5 = scmp.ne.s32.totalorder %s45_s14, %s415_s9  ;;  %p421_p7 = scmp.lt.s32.totalorder %s415_s9, %s415_s9 }
  0x2d   :  { %p422_p8 = por %p421_p7, %p420_p6 }
  0x2f   :  { %p423_p9 = pnand %p422_p8, %p416_p5 }
  0x31   :  { %426 = shalt.err (!%p423_p9)
}
  0x32   :  { %50 = dma.hbm_to_vmem [thread:$0]  %s565_s4, 1024, %s45_s14, [#allocation8], %s456_s7, %s456_s7, %s457_s8  }
  0x33   :  { %449 = dma.done.wait [#allocation5], 64  }
  0x34   :  { %450 = vsyncadd [#allocation5], 4294967232 }
  0x35   :  { %451 = dma.done.wait [#allocation8], 1280  }
  0x36   :  { %452 = vsyncadd [#allocation8], 4294966016  ;;  %v460_v0 = vmov 0.0   ;;  %vm461_vm0 = vmmov 0   ;;  %v349_v1 = vld [vmem:[#allocation7] sm:$0xff]   ;;  %v350_v2 = vld [vmem:[#allocation7 + $0x8] sm:$0xff]   ;;  %v132_v12 = vlaneseq }
  0x37   :  { %313 = vmatprep.subr.bf16.mxu0 %v460_v0  ;;  %317 = vmatprep.mubr.msk.bf16.mxu0 %vm461_vm0, %v460_v0  ;;  %v351_v3 = vld [vmem:[#allocation9] sm:$0xff]   ;;  %v352_v4 = vld [vmem:[#allocation9 + $0x8] sm:$0xff]   ;;  %vm87_vm1 = vcmask 261120   ;;  %v353_v6 = vld [vmem:[#allocation9 + $0x10] sm:$0xff]   ;;  %s143_s8 = smul.u32 3266489909, %s561_s0 }
  0x38   :  { %321 = vmatprep.subr.bf16.mxu1 %v460_v0  ;;  %337 = vmatprep.mubr.msk.bf16.mxu1 %vm461_vm0, %v460_v0  ;;  %v63_v5 = vld [vmem:[#allocation4] sm:$0xf]  ;;  %v354_v7 = vld [vmem:[#allocation9 + $0x18] sm:$0xff]   ;;  %v355_v8 = vld [vmem:[#allocation9 + $0x20] sm:$0xff]   ;;  %v133_v13 = vshrl.u32 %v132_v12, 7  ;;  %v135_v14 = vand.u32 127, %v132_v12 }
  0x39   :  { %314 = vmatpush3.bf16.msra.mxu0 %v349_v1  ;;  %322 = vmatpush3.bf16.msra.mxu1 %v351_v3  ;;  %v356_v9 = vld [vmem:[#allocation9 + $0x28] sm:$0xff]   ;;  %v357_v10 = vld [vmem:[#allocation9 + $0x30] sm:$0xff]   ;;  %v358_v11 = vld [vmem:[#allocation9 + $0x38] sm:$0xff]   ;;  %v144_v18 = vstv %s143_s8 }
  0x3a   :  { %315 = vmatprep.subr.bf16.mxu0 %v460_v0  ;;  %323 = vmatprep.subr.bf16.mxu1 %v460_v0  ;;  %v139_v15 = vmul.u32 128, %v133_v13  ;;  %v288_v26 = vld [vmem:[%s564_s3] ss:$0 sm:$0xff]  ;;  %s462_s3 = smov [#allocation10]  }
  0x3b   :  { %v292_v38 = vld [vmem:[%s566_s5] ss:$0 sm:$0xff]  ;;  %s278_s14 = sshll.u32 %s462_s3, 4  ;;  %s279_s14 = int_to_ptr.vmem [resolvable:$true] %s278_s14 }
  0x3c   :  { %v140_v16 = vadd.s32 %v139_v15, %v135_v14  ;;  %s427_s15 = scalar_lea.vmem %s279_s14, 128  ;;  %p432_p11 = scmp.lt.s32.totalorder %s279_s14, %s279_s14 }
  0x3d   :  { %316 = vmatpush3.bf16.msra.mxu0 %v350_v2  ;;  %324 = vmatpush3.bf16.msra.mxu1 %v352_v4  ;;  %p428_p10 = scmp.ne.s32.totalorder %s279_s14, %s427_s15  ;;  %p433_p12 = scmp.lt.s32.totalorder %s427_s15, %s427_s15 }
  0x3e   :  { %325 = vmatprep.subr.bf16.mxu1 %v460_v0  ;;  %v142_v17 = vmul.u32 2654435769, %v140_v16 }
  0x3f   :  { %p434_p13 = por %p433_p12, %p432_p11 }
  0x40   :  { %318 = vmatmul.mubr.msk.bf16.vlgmr.msra.gmra.mrb[0].mxu0 %vm87_vm1, %v63_v5  ;;  %v145_v19 = vadd.s32 %v144_v18, %v142_v17 }
  0x41   :  { %326 = vmatpush3.bf16.msra.mxu1 %v353_v6  ;;  %p435_p0 = pnand %p434_p13, %p428_p10 }
  0x42   :  { %327 = vmatprep.subr.bf16.mxu1 %v460_v0  ;;  %v146_v20 = vshrl.u32 %v145_v19, 16 }
  0x44   :  { %v147_v21 = vxor.u32 %v146_v20, %v145_v19 }
  0x45   :  { %328 = vmatpush3.bf16.msra.mxu1 %v354_v7 }
  0x46   :  { %329 = vmatprep.subr.bf16.mxu1 %v460_v0  ;;  %v148_v22 = vmul.u32 2246822507, %v147_v21 }
  0x48   :  { %v149_v23 = vshrl.u32 %v148_v22, 13 }
  0x49   :  { %330 = vmatpush3.bf16.msra.mxu1 %v355_v8 }
  0x4a   :  { %331 = vmatprep.subr.bf16.mxu1 %v460_v0  ;;  %v150_v24 = vxor.u32 %v149_v23, %v148_v22 }
  0x4c   :  { %v151_v25 = vmul.u32 3266489909, %v150_v24 }
  0x4d   :  { %332 = vmatpush3.bf16.msra.mxu1 %v356_v9 }
  0x4e   :  { %333 = vmatprep.subr.bf16.mxu1 %v460_v0  ;;  %v152_v27 = vshrl.u32 %v151_v25, 16 }
  0x50   :  { %v153_v32 = vxor.u32 %v152_v27, %v151_v25 }
  0x51   :  { %334 = vmatpush3.bf16.msra.mxu1 %v357_v10 }
  0x52   :  { %335 = vmatprep.subr.bf16.mxu1 %v460_v0  ;;  %v154_v34 = vand.u32 16777215, %v153_v32 }
  0x54   :  { %vm155_vm2 = vcmp.lt.s32.totalorder %v154_v34, 3355443 }
  0x55   :  { %336 = vmatpush3.bf16.msra.mxu1 %v358_v11  ;;  %vm157_vm3 = vmpackc.low %vm155_vm2, %vm155_vm2 }
 0x113   :  { %v125_v28 = vpop.f32.mrb[0].mxu0 }
 0x114   :  { %v126_v29 = vadd.f32 %v288_v26, %v125_v28  ;;  %v319_v30 = vpop.f32.mrb[1].mxu0 }
 0x115   :  { %v128_v31 = vpop.f32.mrb[2].mxu0 }
 0x116   :  { %359 = vtanh.f32 %v126_v29  ;;  %v320_v33 = vpop.f32.mrb[3].mxu0 }
 0x120   :  { %v360_v35 = vpop.eup %359 }
 0x121   :  { %v156_v36 = vpack.c.bf16 %v360_v35, %v360_v35 }
 0x123   :  { %v158_v37 = vsel %vm157_vm3, %v156_v36, 0 }
 0x124   :  { %338 = vmatmul.mubr.bf16.vlgmr.msra.gmra.mrb[0].mxu1 %v158_v37 }
 0x1f7   :  { %v264_v39 = vpop.f32.mrb[0].mxu1 }
 0x1f8   :  { %v265_v40 = vadd.f32 %v292_v38, %v264_v39  ;;  %v339_v41 = vpop.f32.mrb[1].mxu1 }
 0x1f9   :  { %v267_v42 = vpop.f32.mrb[2].mxu1 }
 0x1fa   :  { %v270_v43 = vmax.f32 %v265_v40, 0.0  ;;  %v340_v44 = vpop.f32.mrb[3].mxu1 }
 0x1fc   :  { %271 = vst [vmem:[#allocation10] sm:$0xff] %v270_v43 }
 0x1fd   :  { %438 = shalt.err (!%p435_p0)
}
 0x1fe   :  { %s439_s5 = scalar_lea.hbm %s567_s6, 128 }
 0x1ff   :  { %p440_p1 = scmp.ne.s32.totalorder %s567_s6, %s439_s5  ;;  %p443_p2 = scmp.lt.u32.totalorder %s439_s5, %s567_s6 }
 0x201   :  { %p445_p3 = pnand %p443_p2, %p440_p1 }
 0x203   :  { %448 = shalt.err (!%p445_p3)
}
 0x204   :  { %281 = dma.vmem_to_hbm [thread:$0]  %s279_s14, 128, %s567_s6, [#allocation6]  }
 0x205   :  { %453 = dma.done.wait [#allocation6], 128  }
 0x206   :  { %454 = vsyncadd [#allocation6], 4294967168 }
 0x207   :  { %285 = vsyncpa [#allocation5], 1 }
 0x208   :  { %286 = vsyncpa [#allocation8], 1 }
 0x209   :  { %287 = vsyncpa [#allocation6], 1 }

</bundles_post_ra>
